<compile_context>
chip_gen: v6e
topology: v6e:2x2x1
jax: 0.10.0
libtpu: 0.0.40
codegen_flags: <defaults>
</compile_context>

<pallas_src>
import math

import jax
import jax.numpy as jnp
from jax.experimental import pallas as pl
from jax.experimental.pallas import tpu as pltpu

_LANE = 128


def _cdiv(a, b):
    return -(-a // b)


def _normalize_kernel(x_ref, o_ref):
    x = x_ref[...]
    if not jnp.issubdtype(x.dtype, jnp.floating):
        # Integer images: promote once, in-kernel (no extra XLA pass / HBM trip).
        x = x.astype(o_ref.dtype)
    o_ref[...] = (x / 255.0).astype(o_ref.dtype)


def _choose_lane_width(n):
    """Widest power-of-two lane width (<=2048) that divides n; ragged flag if none."""
    for lw in (2048, 1024, 512, 256, 128):
        if n % lw == 0:
            return lw, False
    return _LANE, True


def normalize_img(x):
    """Pallas TPU implementation of NormalizeImg.forward: returns x / 255.0."""
    orig_shape = x.shape
    in_dtype = x.dtype
    out_dtype = in_dtype if jnp.issubdtype(in_dtype, jnp.floating) else jnp.float32

    n = math.prod(orig_shape)
    in_isz = jnp.dtype(in_dtype).itemsize
    out_isz = jnp.dtype(out_dtype).itemsize

    lane_w, ragged = _choose_lane_width(n)

    flat = x.reshape(-1)
    if ragged:
        # TODO(synk): rare ragged case (n % 128 != 0) still pays a pad + slice
        # round-trip; a masked tail block would avoid the extra HBM passes.
        pad = _cdiv(n, lane_w) * lane_w - n
        flat = jnp.pad(flat, (0, pad))
    rows = flat.shape[0] // lane_w
    x2d = flat.reshape(rows, lane_w)  # pure metadata reshape (row-major)

    # Sublane packing requirement of the narrower dtype (f32 -> 8, bf16 -> 16, u8 -> 32).
    sub = max(8, 32 // max(1, min(in_isz, out_isz)))

    # ~4 MiB per buffered tile, budgeted on the *larger* side (output for u8->f32):
    # per-step DMA >> 0.35 us step overhead even at v7x's ~3.2 TB/s, while
    # 2 x (in + out) double-buffered tiles stay well under the 48 MiB limit below.
    big_isz = max(in_isz, out_isz)
    target_rows = max(sub, (4 << 20) // (lane_w * big_isz))
    block_rows = min(rows, _cdiv(target_rows, sub) * sub)

    # Keep >= ~4 grid steps on mid/large inputs so both v7x TensorCores get work.
    if n * big_isz > (2 << 20) and rows >= 4 * sub:
        cap = _cdiv(_cdiv(rows, 4), sub) * sub
        block_rows = min(block_rows, max(sub, cap))

    grid = _cdiv(rows, block_rows)  # last block may be partial; Pallas masks it

    out2d = pl.pallas_call(
        _normalize_kernel,
        out_shape=jax.ShapeDtypeStruct((rows, lane_w), out_dtype),
        grid_spec=pltpu.PrefetchScalarGridSpec(
            num_scalar_prefetch=0,
            grid=(grid,),
            in_specs=[pl.BlockSpec((block_rows, lane_w), lambda i: (i, 0))],
            out_specs=pl.BlockSpec((block_rows, lane_w), lambda i: (i, 0)),
        ),
        compiler_params=pltpu.CompilerParams(
            dimension_semantics=("parallel",),  # independent rows -> megacore / 2xTC
            vmem_limit_bytes=48 << 20,          # room for 4 MiB tiles on every gen
        ),
        cost_estimate=pl.CostEstimate(
            flops=n,
            transcendentals=0,
            bytes_accessed=n * in_isz + n * out_isz,
        ),
        # NOTE: input_output_aliases={0: 0} is valid on the float path (same
        # dtype/shape) and would avoid a second full-size HBM allocation, but it
        # donates the input buffer; left off so callers can keep using `x`.
    )(x2d)

    out_flat = out2d.reshape(-1)
    if ragged:
        out_flat = out_flat[:n]
    return out_flat.reshape(orig_shape)


if __name__ == "__main__":
    key = jax.random.PRNGKey(0)
    k0, k1, k2 = jax.random.split(key, 3)

    # Small, module-consistent image batch: (B, C, H, W) = (2, 4, 16, 16), f32.
    x = jax.random.uniform(k0, (2, 4, 16, 16), jnp.float32, minval=0.0, maxval=255.0)
    out = jax.block_until_ready(normalize_img(x))
    ref = x / 255.0
    assert out.shape == x.shape and out.dtype == ref.dtype
    assert jnp.max(jnp.abs(out - ref)) < 1e-6

    # Larger check: multi-step pipelined grid, no pad / slice (1024 | 64*3*84*84).
    x_big = jax.random.uniform(
        k1, (64, 3, 84, 84), jnp.float32, minval=0.0, maxval=255.0
    )
    out_big = jax.block_until_ready(normalize_img(x_big))
    ref_big = x_big / 255.0
    assert out_big.shape == x_big.shape
    assert jnp.max(jnp.abs(out_big - ref_big)) < 1e-6

    # Integer-image path: uint8 -> float32 promotion inside the kernel.
    x_u8 = jax.random.randint(k2, (16, 3, 84, 84), 0, 256, jnp.int32).astype(jnp.uint8)
    out_u8 = jax.block_until_ready(normalize_img(x_u8))
    ref_u8 = x_u8.astype(jnp.float32) / 255.0
    assert out_u8.dtype == jnp.float32 and out_u8.shape == x_u8.shape
    assert jnp.max(jnp.abs(out_u8 - ref_u8)) < 1e-6

    print("KERNEL_OK")
</pallas_src>

<mosaic_0001>
module attributes {stable_mosaic.version = 11 : i64} {
  func.func @_normalize_kernel(%arg0: i32, %arg1: memref<1x2048xf32, #tpu.memory_space<vmem>>, %arg2: memref<1x2048xf32, #tpu.memory_space<vmem>>) attributes {dimension_semantics = [#tpu.dimension_semantics<parallel>], iteration_bounds = array<i64: 1>, scalar_prefetch = 0 : i64, scratch_operands = 0 : i64, tpu.core_type = #tpu.core_type<tc>, window_params = [{transform_indices = @transform_0, window_bounds = array<i64: 1, 2048>}, {transform_indices = @transform_1, window_bounds = array<i64: 1, 2048>}]} {
    %c0 = arith.constant 0 : index
    %c0_0 = arith.constant 0 : index
    %0 = vector.load %arg1[%c0, %c0_0] : memref<1x2048xf32, #tpu.memory_space<vmem>>, vector<1x2048xf32>
    %cst = arith.constant 2.550000e+02 : f32
    %1 = vector.broadcast %cst : f32 to vector<1x2048xf32>
    %2 = arith.divf %0, %1 : vector<1x2048xf32>
    %c0_1 = arith.constant 0 : index
    %c0_2 = arith.constant 0 : index
    %3 = vector.load %arg2[%c0_1, %c0_2] : memref<1x2048xf32, #tpu.memory_space<vmem>>, vector<1x2048xf32>
    tpu.vector_store %arg2[%c0_1, %c0_2], %2 {strides = array<i32>} : memref<1x2048xf32, #tpu.memory_space<vmem>>, vector<1x2048xf32>,
    return
  }
  func.func @transform_0(%arg0: i32) -> (i32, i32) {
    %c0_i32 = arith.constant 0 : i32
    %c0_i32_0 = arith.constant 0 : i32
    return %arg0, %c0_i32 : i32, i32
  }
  func.func @transform_1(%arg0: i32) -> (i32, i32) {
    %c0_i32 = arith.constant 0 : i32
    %c0_i32_0 = arith.constant 0 : i32
    return %arg0, %c0_i32 : i32, i32
  }
}

</mosaic_0001>

<bundles_post_ra>
// kernel: tpu_custom_call.1
= control target key start
LH: loop header
LB: loop body
LE: loop exit
PB: predicated region body
PF: predicated region fallthrough
CT: control target
= control target key end

     0   :  { %6 = vsyncpa [#allocation3], 0  ;;  %s107_s0 = inlined_call_operand.hbm [shape: f32[1,2048], index: 0, kind: input, shape index: {}]   ;;  %s108_s1 = inlined_call_operand.hbm [shape: f32[1,2048], index: 1, kind: output, shape index: {}]  }
   0x1   :  { %7 = vsyncpa [#allocation4], 0  ;;  %s89_s6 = smov [#allocation2]  }
   0x2   :  { %s14_s7 = sshll.u32 %s89_s6, 4  ;;  %s15_s7 = int_to_ptr.vmem [resolvable:$true] %s14_s7 }
   0x3   :  { %s53_s8 = scalar_lea.vmem %s15_s7, 256  ;;  %p58_p1 = scmp.lt.s32.totalorder %s15_s7, %s15_s7 }
   0x4   :  { %p54_p0 = scmp.ne.s32.totalorder %s15_s7, %s53_s8  ;;  %p59_p2 = scmp.lt.s32.totalorder %s53_s8, %s53_s8 }
   0x6   :  { %p60_p3 = por %p59_p2, %p58_p1 }
   0x8   :  { %p61_p4 = pnand %p60_p3, %p54_p0 }
   0xa   :  { %64 = shalt.err (!%p61_p4)
}
   0xb   :  { %17 = dma.hbm_to_vmem [thread:$0]  %s107_s0, 256, %s15_s7, [#allocation3]  }
   0xc   :  { %85 = dma.done.wait [#allocation3], 256  }
   0xd   :  { %86 = vsyncadd [#allocation3], 4294967040  ;;  %s90_s11 = smov [#allocation5]   ;;  %v21_v0 = vld [vmem:[#allocation2] sm:$0xff]  ;;  %v22_v1 = vld [vmem:[#allocation2 + $0x8] sm:$0xff] }
   0xe   :  { %s34_s12 = sshll.u32 %s90_s11, 4  ;;  %v24_v2 = vmul.f32 0.003921569, %v21_v0  ;;  %v25_v3 = vmul.f32 0.003921569, %v22_v1  ;;  %s35_s12 = int_to_ptr.vmem [resolvable:$true] %s34_s12 }
   0xf   :  { %s65_s13 = scalar_lea.vmem %s35_s12, 256  ;;  %p70_p6 = scmp.lt.s32.totalorder %s35_s12, %s35_s12 }
  0x10   :  { %26 = vst [vmem:[#allocation5] sm:$0xff] %v24_v2  ;;  %27 = vst [vmem:[#allocation5 + $0x8] sm:$0xff] %v25_v3  ;;  %p66_p5 = scmp.ne.s32.totalorder %s35_s12, %s65_s13  ;;  %p71_p7 = scmp.lt.s32.totalorder %s65_s13, %s65_s13 }
  0x12   :  { %p72_p8 = por %p71_p7, %p70_p6 }
  0x14   :  { %p73_p9 = pnand %p72_p8, %p66_p5 }
  0x16   :  { %76 = shalt.err (!%p73_p9)
}
  0x17   :  { %37 = dma.vmem_to_hbm [thread:$0]  %s35_s12, 256, %s108_s1, [#allocation4]  }
  0x18   :  { %87 = dma.done.wait [#allocation4], 256  }
  0x19   :  { %88 = vsyncadd [#allocation4], 4294967040 }
  0x1a   :  { %41 = vsyncpa [#allocation3], 1 }
  0x1b   :  { %42 = vsyncpa [#allocation4], 1 }

</bundles_post_ra>
